<compile_context>
chip_gen: v7x
topology: tpu7x:2x2x1
jax: 0.10.0
libtpu: 0.0.40
codegen_flags: <defaults>
</compile_context>

<pallas_src>
import functools

import numpy as np

import jax
import jax.numpy as jnp
from jax.experimental import pallas as pl
from jax.experimental.pallas import tpu as pltpu


LANE = 128
_MIB = 1024 * 1024


def _round_up(x, m):
    return (x + m - 1) // m * m


def _largest_divisor_tile(dim, candidates):
    for c in candidates:
        if dim % c == 0:
            return c
    return LANE


def _choose_n_tiles(n):
    """Pick (n_pad, tile_n, tile_k) for the node axis.

    Picks the largest adjacency column tile whose padding overhead stays bounded (avoids the
    tile-collapse-to-128 trap for awkward N), then the largest row tile dividing n_pad,
    preferring >= 2 row tiles so the "parallel" grid axis can split across v7x's 2 TCs.
    """
    n128 = _round_up(max(n, LANE), LANE)
    tile_k = LANE
    for c in (1024, 512, 256, 128):
        if _round_up(n128, c) - n128 <= n128 // 4:
            tile_k = c
            break
    n_pad = _round_up(n128, tile_k)
    tile_n = _largest_divisor_tile(n_pad, (512, 256, 128))
    if n_pad // tile_n < 2:
        for c in (256, 128):
            if c < tile_n and n_pad % c == 0 and n_pad // c >= 2:
                tile_n = c
                break
    return n_pad, tile_n, tile_k


def _vmem_limit_bytes(estimate):
    # Explicit scoped-VMEM limit: v5e default is only 16 MiB, v6e/v7x 32 MiB.
    return int(min(48 * _MIB, max(estimate + 2 * _MIB, 32 * _MIB)))


def _pad2(a, rows, cols):
    return jnp.pad(a, ((0, rows - a.shape[0]), (0, cols - a.shape[1])))


# ----------------------------- fused linear (Y = X @ [W_l|W_r] + [0|b]) -------


def _linear_resident_kernel(x_ref, w_ref, b_ref, y_ref):
    """Y_tile = X_tile @ W + b  (weight fully VMEM-resident, no K axis / scratch)."""
    y_ref[...] = (jnp.dot(x_ref[...], w_ref[...], preferred_element_type=jnp.float32)
                  + b_ref[...]).astype(y_ref.dtype)


def _linear_ktiled_kernel(x_ref, w_ref, b_ref, y_ref, acc_ref):
    """K-tiled fallback for very wide feature matrices."""
    k = pl.program_id(1)

    @pl.when(k == 0)
    def _():
        acc_ref[...] = jnp.zeros_like(acc_ref)

    acc_ref[...] += jnp.dot(x_ref[...], w_ref[...], preferred_element_type=jnp.float32)

    @pl.when(k == pl.num_programs(1) - 1)
    def _():
        y_ref[...] = (acc_ref[...] + b_ref[...]).astype(y_ref.dtype)


def fused_linear(x, w, b_row, *, tile_m, out_dtype):
    """Y = X @ [W_l | W_r] + [0 | b]  (bias folded into the self half, lane-dense output)."""
    M, K = x.shape
    Nout = w.shape[1]
    flops = 2 * M * K * Nout
    bytes_accessed = (M * K + K * Nout) * 2 + Nout * 4 + M * Nout * 2

    resident_vmem = (2 * tile_m * K * 2        # X row tile (double-buffered)
                     + K * Nout * 2            # resident weight
                     + 2 * Nout * 4            # bias row
                     + 2 * tile_m * Nout * 2)  # output tile
    if resident_vmem <= 24 * _MIB:
        return pl.pallas_call(
            _linear_resident_kernel,
            out_shape=jax.ShapeDtypeStruct((M, Nout), out_dtype),
            grid=(M // tile_m,),
            in_specs=[
                pl.BlockSpec((tile_m, K), lambda i: (i, 0)),
                pl.BlockSpec((K, Nout), lambda i: (0, 0)),     # resident weight
                pl.BlockSpec((1, Nout), lambda i: (0, 0)),     # bias row
            ],
            out_specs=pl.BlockSpec((tile_m, Nout), lambda i: (i, 0)),
            compiler_params=pltpu.CompilerParams(
                dimension_semantics=("parallel",),
                vmem_limit_bytes=_vmem_limit_bytes(resident_vmem)),
            cost_estimate=pl.CostEstimate(flops=flops, transcendentals=0,
                                          bytes_accessed=bytes_accessed),
        )(x, w, b_row)

    tile_k = _largest_divisor_tile(K, (512, 256, 128))
    ktiled_vmem = (2 * tile_m * tile_k * 2 + 2 * tile_k * Nout * 2 + 2 * Nout * 4
                   + 2 * tile_m * Nout * 2 + tile_m * Nout * 4)
    return pl.pallas_call(
        _linear_ktiled_kernel,
        out_shape=jax.ShapeDtypeStruct((M, Nout), out_dtype),
        grid=(M // tile_m, K // tile_k),
        in_specs=[
            pl.BlockSpec((tile_m, tile_k), lambda i, k: (i, k)),
            pl.BlockSpec((tile_k, Nout), lambda i, k: (k, 0)),
            pl.BlockSpec((1, Nout), lambda i, k: (0, 0)),
        ],
        out_specs=pl.BlockSpec((tile_m, Nout), lambda i, k: (i, 0)),
        scratch_shapes=[pltpu.VMEM((tile_m, Nout), jnp.float32)],
        compiler_params=pltpu.CompilerParams(
            dimension_semantics=("parallel", "arbitrary"),
            vmem_limit_bytes=_vmem_limit_bytes(ktiled_vmem)),
        cost_estimate=pl.CostEstimate(flops=flops, transcendentals=0,
                                      bytes_accessed=bytes_accessed),
    )(x, w, b_row)


# ----------------------------- block-sparse mean aggregation ------------------


def _agg_kernel(cid_ref, nblk_ref, a_ref, yl_ref, yr_ref, inv_ref, o_ref, acc_ref,
                *, apply_relu, tile_k, yl_resident):
    """out[i] = (sum over nonzero blocks A_count[i,k] @ Y_l[k]) * inv_deg[i] + Y_r[i]."""
    i = pl.program_id(0)
    k = pl.program_id(1)

    @pl.when(k == 0)
    def _():
        acc_ref[...] = jnp.zeros_like(acc_ref)

    @pl.when(k < nblk_ref[i])          # skip padded (all-zero) column blocks
    def _():
        if yl_resident:
            start = pl.multiple_of(cid_ref[i, k] * tile_k, tile_k)
            yl = yl_ref[pl.ds(start, tile_k), :]
        else:
            yl = yl_ref[...]
        a = a_ref[...].astype(yl.dtype)    # int8 counts -> bf16 on the (idle) VPU
        acc_ref[...] += jnp.dot(a, yl, preferred_element_type=jnp.float32)

    @pl.when(k == pl.num_programs(1) - 1)
    def _():
        out = acc_ref[...] * inv_ref[...] + yr_ref[...].astype(jnp.float32)
        if apply_relu:
            out = jnp.maximum(out, 0.0)
        o_ref[...] = out.astype(o_ref.dtype)


def sage_aggregate(col_ids, nblk, adj_i8, y, inv_deg, *, h_pad, tile_n, tile_k,
                   max_blk, nnz_blocks, apply_relu, out_dtype, yl_resident):
    n_pad = adj_i8.shape[0]
    n_row = n_pad // tile_n

    if yl_resident:
        # Whole Y_l stays resident in VMEM across the grid (constant index_map);
        # the kernel slices the needed row block with pl.ds.
        yl_spec = pl.BlockSpec((n_pad, h_pad), lambda i, k, cid, nb: (0, 0))
        yl_vmem = n_pad * h_pad * 2
        yl_hbm = n_pad * h_pad * 2
    else:
        yl_spec = pl.BlockSpec((tile_k, h_pad), lambda i, k, cid, nb: (cid[i, k], 0))
        yl_vmem = 2 * tile_k * h_pad * 2
        yl_hbm = nnz_blocks * tile_k * h_pad * 2

    flops = 2 * nnz_blocks * tile_n * tile_k * h_pad
    bytes_accessed = (nnz_blocks * tile_n * tile_k    # int8 adjacency blocks actually read
                      + yl_hbm                        # Y_l
                      + n_pad * h_pad * 2             # Y_r
                      + n_pad * 4                     # 1/deg
                      + n_pad * h_pad * 2)            # output
    vmem_est = (2 * tile_n * tile_k                   # adjacency tile (int8, double-buffered)
                + yl_vmem
                + 2 * tile_n * h_pad * 2              # Y_r tile
                + 2 * tile_n * 4                      # 1/deg tile
                + 2 * tile_n * h_pad * 2              # output tile
                + tile_n * h_pad * 4)                 # f32 accumulator

    kernel = functools.partial(_agg_kernel, apply_relu=apply_relu,
                               tile_k=tile_k, yl_resident=yl_resident)
    return pl.pallas_call(
        kernel,
        out_shape=jax.ShapeDtypeStruct((n_pad, h_pad), out_dtype),
        grid_spec=pltpu.PrefetchScalarGridSpec(
            num_scalar_prefetch=2,
            grid=(n_row, max_blk),
            in_specs=[
                pl.BlockSpec((tile_n, tile_k), lambda i, k, cid, nb: (i, cid[i, k])),
                yl_spec,
                pl.BlockSpec((tile_n, h_pad), lambda i, k, cid, nb: (i, 1)),   # Y_r half
                pl.BlockSpec((tile_n, 1), lambda i, k, cid, nb: (i, 0)),       # 1/deg
            ],
            out_specs=pl.BlockSpec((tile_n, h_pad), lambda i, k, cid, nb: (i, 0)),
            scratch_shapes=[pltpu.VMEM((tile_n, h_pad), jnp.float32)],
        ),
        compiler_params=pltpu.CompilerParams(
            dimension_semantics=("parallel", "arbitrary"),
            vmem_limit_bytes=_vmem_limit_bytes(vmem_est)),
        cost_estimate=pl.CostEstimate(flops=flops, transcendentals=0,
                                      bytes_accessed=bytes_accessed),
    )(col_ids, nblk, adj_i8, y, y, inv_deg)


# ------------------------------- glue (host + JAX) -----------------------------


def build_graph_blocks(edge_index, n_pad, tile_n, tile_k):
    """Host-side preprocessing: int8 multiplicity counts, f32 1/deg, and the per-row-tile
    nonzero column-block table used for block-sparse skipping via scalar prefetch."""
    src = np.asarray(jax.device_get(edge_index[0])).astype(np.int64)
    dst = np.asarray(jax.device_get(edge_index[1])).astype(np.int64)

    # TODO(synk): dense padded NxN count matrix in HBM; a CSR/edge-list pipeline would be
    # needed for graphs where that does not fit.
    counts = np.zeros((n_pad, n_pad), np.int32)
    if src.size:
        np.add.at(counts, (dst, src), 1)
    assert counts.max() < 128, "edge multiplicity must fit in int8"
    adj_i8 = counts.astype(np.int8)
    deg = counts.sum(axis=1).astype(np.float32)
    inv_deg = (1.0 / np.maximum(deg, 1.0)).reshape(n_pad, 1).astype(np.float32)

    n_row = n_pad // tile_n
    blocks = [set() for _ in range(n_row)]
    for r, c in zip((dst // tile_n).tolist(), (src // tile_k).tolist()):
        blocks[r].add(c)
    max_blk = max(1, max(len(s) for s in blocks))
    col_ids = np.zeros((n_row, max_blk), np.int32)
    nblk = np.zeros((n_row,), np.int32)
    for i, s in enumerate(blocks):
        blks = sorted(s)
        nblk[i] = len(blks)
        if not blks:
            blks = [0]
        # Pad by repeating the last valid block: padded steps revisit the same block
        # (no extra DMA) and are skipped by pl.when in the kernel.
        col_ids[i] = np.asarray(blks + [blks[-1]] * (max_blk - len(blks)), np.int32)
    return (jnp.asarray(adj_i8), jnp.asarray(inv_deg),
            jnp.asarray(col_ids), jnp.asarray(nblk), max_blk, int(nblk.sum()))


def init_params(key, num_features, hidden_size, num_layers):
    shapes = [num_features] + [hidden_size] * num_layers
    params = []
    for layer in range(num_layers):
        fin, fout = shapes[layer], shapes[layer + 1]
        key, k1, k2, k3 = jax.random.split(key, 4)
        scale = 1.0 / jnp.sqrt(jnp.float32(fin))
        w_l = jax.random.uniform(k1, (fin, fout), jnp.float32, -scale, scale)
        w_r = jax.random.uniform(k2, (fin, fout), jnp.float32, -scale, scale)
        b = jax.random.uniform(k3, (fout,), jnp.float32, -scale, scale)
        params.append((w_l, w_r, b))
    return params


def sage_forward(x, edge_index, params, *, dtype=jnp.bfloat16):
    """Forward pass of SAGE (eval mode). bf16 operands, f32 accumulation, exact int8
    adjacency counts + f32 1/deg mean scaling."""
    N, F = x.shape
    num_layers = len(params)
    H = params[0][0].shape[1]

    n_pad, tile_n, tile_k = _choose_n_tiles(N)
    f_pad = _round_up(max(F, LANE), LANE)
    h_pad = _round_up(max(H, LANE), LANE)

    adj_i8, inv_deg, col_ids, nblk, max_blk, nnz_blocks = build_graph_blocks(
        edge_index, n_pad, tile_n, tile_k)

    # Keep Y_l resident in VMEM across the aggregation grid when it fits.
    yl_resident = (n_pad * h_pad * 2) <= 12 * _MIB

    x_pad = _pad2(x, n_pad, f_pad).astype(dtype)

    for i, (w_l, w_r, b) in enumerate(params):
        fin_pad = x_pad.shape[1]
        w_cat = jnp.concatenate(
            [_pad2(w_l, fin_pad, h_pad), _pad2(w_r, fin_pad, h_pad)], axis=1).astype(dtype)
        # The bias belongs only to the lin_l path and is applied once per node, so it is
        # folded into the self (W_r) half of Y (it is never aggregated).
        b_row = jnp.concatenate(
            [jnp.zeros((h_pad,), jnp.float32),
             jnp.pad(b, (0, h_pad - b.shape[0])).astype(jnp.float32)]).reshape(1, 2 * h_pad)
        y = fused_linear(x_pad, w_cat, b_row, tile_m=tile_n, out_dtype=dtype)
        x_pad = sage_aggregate(col_ids, nblk, adj_i8, y, inv_deg,
                               h_pad=h_pad, tile_n=tile_n, tile_k=tile_k,
                               max_blk=max_blk, nnz_blocks=nnz_blocks,
                               apply_relu=(i != num_layers - 1),
                               out_dtype=dtype, yl_resident=yl_resident)
    return x_pad[:N, :H].astype(jnp.float32)


def sage_forward_ref(x, edge_index, params, *, dtype=jnp.bfloat16):
    """Pure-JAX reference following the same dtype path (bf16 operands, f32 accumulation,
    exact counts with f32 1/deg scaling, bias folded into the self half)."""
    N = x.shape[0]
    H = params[0][0].shape[1]
    src, dst = edge_index[0], edge_index[1]
    counts = jnp.zeros((N, N), jnp.float32).at[dst, src].add(1.0)
    inv_deg = 1.0 / jnp.maximum(counts.sum(axis=1, keepdims=True), 1.0)
    counts = counts.astype(dtype)
    h = x.astype(dtype)
    num_layers = len(params)
    for i, (w_l, w_r, b) in enumerate(params):
        w_cat = jnp.concatenate([w_l, w_r], axis=1).astype(dtype)
        b_row = jnp.concatenate([jnp.zeros((H,), jnp.float32),
                                 b.astype(jnp.float32)])[None, :]
        y = (jnp.dot(h, w_cat, preferred_element_type=jnp.float32) + b_row).astype(dtype)
        yl, yr = y[:, :H], y[:, H:]
        out = (jnp.dot(counts, yl, preferred_element_type=jnp.float32) * inv_deg
               + yr.astype(jnp.float32))
        if i != num_layers - 1:
            out = jnp.maximum(out, 0.0)
        h = out.astype(dtype)
    return h.astype(jnp.float32)


# --------------------------------- main ---------------------------------------

if __name__ == "__main__":
    key = jax.random.PRNGKey(0)

    num_nodes = 64
    num_features = 32
    hidden_size = 32
    num_layers = 2
    num_edges = 256

    k_x, k_src, k_dst, k_p = jax.random.split(key, 4)
    x = jax.random.normal(k_x, (num_nodes, num_features), jnp.float32)
    src = jax.random.randint(k_src, (num_edges,), 0, num_nodes, jnp.int32)
    dst = jax.random.randint(k_dst, (num_edges,), 0, num_nodes, jnp.int32)
    edge_index = jnp.stack([src, dst], axis=0)

    params = init_params(k_p, num_features, hidden_size, num_layers)

    out = jax.block_until_ready(sage_forward(x, edge_index, params))
    ref = jax.block_until_ready(sage_forward_ref(x, edge_index, params))

    assert out.shape == (num_nodes, hidden_size)
    err = float(jnp.max(jnp.abs(out - ref)))
    assert jnp.allclose(out, ref, atol=1e-2, rtol=1e-2), f"max abs err = {err}"

    print("KERNEL_OK")
</pallas_src>

<mosaic_0001>
module attributes {stable_mosaic.version = 11 : i64} {
  func.func @_linear_resident_kernel(%arg0: i32, %arg1: memref<128x128xbf16, #tpu.memory_space<vmem>>, %arg2: memref<128x256xbf16, #tpu.memory_space<vmem>>, %arg3: memref<1x256xf32, #tpu.memory_space<vmem>>, %arg4: memref<128x256xbf16, #tpu.memory_space<vmem>>) attributes {dimension_semantics = [#tpu.dimension_semantics<parallel>], iteration_bounds = array<i64: 1>, scalar_prefetch = 0 : i64, scratch_operands = 0 : i64, tpu.core_type = #tpu.core_type<tc>, window_params = [{transform_indices = @transform_0, window_bounds = array<i64: 128, 128>}, {pipeline_mode = #tpu.pipeline_mode<synchronous>, transform_indices = @transform_1, window_bounds = array<i64: 128, 256>}, {pipeline_mode = #tpu.pipeline_mode<synchronous>, transform_indices = @transform_2, window_bounds = array<i64: 1, 256>}, {transform_indices = @transform_3, window_bounds = array<i64: 128, 256>}]} {
    %c0 = arith.constant 0 : index
    %c0_0 = arith.constant 0 : index
    %0 = vector.load %arg1[%c0, %c0_0] : memref<128x128xbf16, #tpu.memory_space<vmem>>, vector<128x128xbf16>
    %c0_1 = arith.constant 0 : index
    %c0_2 = arith.constant 0 : index
    %1 = vector.load %arg2[%c0_1, %c0_2] : memref<128x256xbf16, #tpu.memory_space<vmem>>, vector<128x256xbf16>
    %cst = arith.constant dense<0.000000e+00> : vector<128x256xf32>
    %2 = tpu.matmul %0, %1, %cst {dimension_numbers = #tpu.dot_dimension_numbers<[1], [0], [0], [1], [0, 0, 1, 1], [], []>} : vector<128x128xbf16>, vector<128x256xbf16>, vector<128x256xf32> -> vector<128x256xf32>
    %c0_3 = arith.constant 0 : index
    %c0_4 = arith.constant 0 : index
    %3 = vector.load %arg3[%c0_3, %c0_4] : memref<1x256xf32, #tpu.memory_space<vmem>>, vector<1x256xf32>
    %4 = vector.broadcast %3 : vector<1x256xf32> to vector<128x256xf32>
    %5 = arith.addf %2, %4 : vector<128x256xf32>
    %6 = arith.truncf %5 : vector<128x256xf32> to vector<128x256xbf16>
    %c0_5 = arith.constant 0 : index
    %c0_6 = arith.constant 0 : index
    %7 = vector.load %arg4[%c0_5, %c0_6] : memref<128x256xbf16, #tpu.memory_space<vmem>>, vector<128x256xbf16>
    tpu.vector_store %arg4[%c0_5, %c0_6], %6 {strides = array<i32>} : memref<128x256xbf16, #tpu.memory_space<vmem>>, vector<128x256xbf16>,
    return
  }
  func.func @transform_0(%arg0: i32) -> (i32, i32) {
    %c0_i32 = arith.constant 0 : i32
    %c0_i32_0 = arith.constant 0 : i32
    return %arg0, %c0_i32 : i32, i32
  }
  func.func @transform_1(%arg0: i32) -> (i32, i32) {
    %c0_i32 = arith.constant 0 : i32
    %c0_i32_0 = arith.constant 0 : i32
    %c0_i32_1 = arith.constant 0 : i32
    return %c0_i32, %c0_i32_0 : i32, i32
  }
  func.func @transform_2(%arg0: i32) -> (i32, i32) {
    %c0_i32 = arith.constant 0 : i32
    %c0_i32_0 = arith.constant 0 : i32
    %c0_i32_1 = arith.constant 0 : i32
    return %c0_i32, %c0_i32_0 : i32, i32
  }
  func.func @transform_3(%arg0: i32) -> (i32, i32) {
    %c0_i32 = arith.constant 0 : i32
    %c0_i32_0 = arith.constant 0 : i32
    return %arg0, %c0_i32 : i32, i32
  }
}

</mosaic_0001>

<bundles_post_ra>
// kernel: tpu_custom_call.1
= control target key start
LH: loop header
LB: loop body
LE: loop exit
PB: predicated region body
PF: predicated region fallthrough
CT: control target
= control target key end

     0   :  { %8 = vsyncpa [#allocation3], 0  ;;  %s760_s0 = inlined_call_operand.hbm [shape: bf16[128,128], index: 0, kind: input, shape index: {}]   ;;  %s761_s1 = inlined_call_operand.hbm [shape: bf16[128,256], index: 1, kind: input, shape index: {}]   ;;  %s762_s2 = inlined_call_operand.vmem [shape: f32[1,256], index: 2, kind: input, shape index: {}]   ;;  %s763_s3 = inlined_call_operand.hbm [shape: bf16[128,256], index: 3, kind: output, shape index: {}]  }
   0x1   :  { %9 = vsyncpa [#allocation6], 0 }
   0x2   :  { %10 = vsyncpa [#allocation4], 0  ;;  %s643_s12 = smov [#allocation2]   ;;  %s571_s16 = scalar_lea.hbm %s760_s0, 1024 }
   0x3   :  { %s16_s13 = sshll.u32 %s643_s12, 4  ;;  %p572_p0 = scmp.ne.s32.totalorder %s760_s0, %s571_s16  ;;  %s17_s13 = int_to_ptr.vmem [resolvable:$true] %s16_s13 }
   0x4   :  { %p575_p1 = scmp.lt.u32.totalorder %s571_s16, %s760_s0 }
   0x6   :  { %p577_p2 = pnand %p575_p1, %p572_p0 }
   0x8   :  { %580 = shalt.err (!%p577_p2)
}
   0x9   :  { %s581_s21 = scalar_lea.vmem %s17_s13, 1024  ;;  %p586_p4 = scmp.lt.s32.totalorder %s17_s13, %s17_s13 }
   0xa   :  { %p582_p3 = scmp.ne.s32.totalorder %s17_s13, %s581_s21  ;;  %p587_p5 = scmp.lt.s32.totalorder %s581_s21, %s581_s21 }
   0xc   :  { %p588_p6 = por %p587_p5, %p586_p4 }
   0xe   :  { %p589_p7 = pnand %p588_p6, %p582_p3 }
  0x10   :  { %592 = shalt.err (!%p589_p7)
}
  0x11   :  { %s644_s22 = smov 64   ;;  %s645_s23 = smov 4  }
  0x12   :  { %22 = dma.hbm_to_vmem [thread:$0]  %s760_s0, 1024, %s17_s13, [#allocation3], %s644_s22, %s644_s22, %s645_s23  }
  0x13   :  { %s646_s26 = smov [#allocation5]   ;;  %s593_s30 = scalar_lea.hbm %s761_s1, 2048 }
  0x14   :  { %s28_s27 = sshll.u32 %s646_s26, 4  ;;  %p594_p8 = scmp.ne.s32.totalorder %s761_s1, %s593_s30  ;;  %s29_s27 = int_to_ptr.vmem [resolvable:$true] %s28_s27 }
  0x15   :  { %p597_p9 = scmp.lt.u32.totalorder %s593_s30, %s761_s1 }
  0x17   :  { %p599_p10 = pnand %p597_p9, %p594_p8 }
  0x19   :  { %602 = shalt.err (!%p599_p10)
}
  0x1a   :  { %s603_s8 = scalar_lea.vmem %s29_s27, 2048  ;;  %p608_p12 = scmp.lt.s32.totalorder %s29_s27, %s29_s27 }
  0x1b   :  { %p604_p11 = scmp.ne.s32.totalorder %s29_s27, %s603_s8  ;;  %p609_p13 = scmp.lt.s32.totalorder %s603_s8, %s603_s8 }
  0x1d   :  { %p610_p0 = por %p609_p13, %p608_p12 }
  0x1f   :  { %p611_p1 = pnand %p610_p0, %p604_p11 }
  0x21   :  { %614 = shalt.err (!%p611_p1)
}
  0x22   :  { %s647_s0 = smov 128   ;;  %s648_s9 = smov 8  }
  0x23   :  { %34 = dma.hbm_to_vmem [thread:$0]  %s761_s1, 2048, %s29_s27, [#allocation6], %s647_s0, %s647_s0, %s648_s9  }
  0x24   :  { %637 = dma.done.wait [#allocation3], 1024  }
  0x25   :  { %638 = vsyncadd [#allocation3], 4294966272 }
  0x26   :  { %639 = dma.done.wait [#allocation6], 2048  }
  0x27   :  { %640 = vsyncadd [#allocation6], 4294965248  ;;  %v649_v0 = vmov 0   ;;  %v539_v1 = vld [vmem:[#allocation5 + $0x4] ss:$8 sps:$4 sm:$0xff]   ;;  %v567_v21 = vld [vmem:[#allocation2 + $0x10] sm:$0xff]   ;;  %v78_v25 = vlaneseq }
  0x28   :  { %248 = vmatprep.mubr.bf16.mxu0 %v649_v0  ;;  %288 = vmatprep.mubr.bf16.mxu1 %v649_v0  ;;  %v541_v2 = vld [vmem:[#allocation5] ss:$8 sps:$4 sm:$0xff]   ;;  %v542_v3 = vld [vmem:[#allocation5 + $0x14] ss:$8 sps:$4 sm:$0xff]   ;;  %v544_v4 = vld [vmem:[#allocation5 + $0x10] ss:$8 sps:$4 sm:$0xff]  }
  0x29   :  { %216 = vmatprep.subr.bf16.mxu0 %v539_v1  ;;  %515 = vmatprep.subr.bf16.mxu1 %v539_v1  ;;  %v545_v5 = vld [vmem:[#allocation5 + $0x24] ss:$8 sps:$4 sm:$0xff]   ;;  %v547_v6 = vld [vmem:[#allocation5 + $0x20] ss:$8 sps:$4 sm:$0xff]   ;;  %v548_v7 = vld [vmem:[#allocation5 + $0x34] ss:$8 sps:$4 sm:$0xff]  }
  0x2a   :  { %217 = vmatpush1.bf16.msra.mxu0 %v541_v2  ;;  %523 = vmatpush1.bf16.msra.mxu1 %v541_v2  ;;  %v550_v8 = vld [vmem:[#allocation5 + $0x30] ss:$8 sps:$4 sm:$0xff]   ;;  %v551_v9 = vld [vmem:[#allocation5 + $0x44] ss:$8 sps:$4 sm:$0xff]   ;;  %v553_v10 = vld [vmem:[#allocation5 + $0x40] ss:$8 sps:$4 sm:$0xff]  }
  0x2b   :  { %218 = vmatprep.subr.bf16.mxu0 %v542_v3  ;;  %516 = vmatprep.subr.bf16.mxu1 %v542_v3  ;;  %v554_v11 = vld [vmem:[#allocation5 + $0x54] ss:$8 sps:$4 sm:$0xff]   ;;  %v556_v12 = vld [vmem:[#allocation5 + $0x50] ss:$8 sps:$4 sm:$0xff]   ;;  %v557_v13 = vld [vmem:[#allocation5 + $0x64] ss:$8 sps:$4 sm:$0xff]  }
  0x2c   :  { %v559_v14 = vld [vmem:[#allocation5 + $0x60] ss:$8 sps:$4 sm:$0xff]   ;;  %v560_v15 = vld [vmem:[#allocation5 + $0x74] ss:$8 sps:$4 sm:$0xff]   ;;  %v562_v16 = vld [vmem:[#allocation5 + $0x70] ss:$8 sps:$4 sm:$0xff]  }
  0x2d   :  { %v563_v17 = vld [vmem:[#allocation2] sm:$0xff]   ;;  %v565_v19 = vld [vmem:[#allocation2 + $0x8] sm:$0xff]   ;;  %v568_v22 = vld [vmem:[#allocation2 + $0x30] sm:$0xff]   ;;  %v79_v26 = vshrl.u32 %v78_v25, 7 }
  0x2e   :  { %219 = vmatpush1.bf16.msra.mxu0 %v544_v4  ;;  %524 = vmatpush1.bf16.msra.mxu1 %v544_v4  ;;  %v564_v18 = vld [vmem:[#allocation2 + $0x20] sm:$0xff]   ;;  %v566_v20 = vld [vmem:[#allocation2 + $0x28] sm:$0xff]   ;;  %v569_v23 = vld [vmem:[#allocation2 + $0x18] sm:$0xff]  }
  0x2f   :  { %220 = vmatprep.subr.bf16.mxu0 %v545_v5  ;;  %517 = vmatprep.subr.bf16.mxu1 %v545_v5  ;;  %v570_v24 = vld [vmem:[#allocation2 + $0x38] sm:$0xff]   ;;  %v80_v27 = vsub.s32 0, %v79_v26  ;;  %v76_v28 = vld [vmem:[%s762_s2] sm:$0x3]  ;;  %v84_v29 = vsub.s32 1, %v79_v26  ;;  %s650_s2 = smov [#allocation7]  }
  0x30   :  { %s446_s13 = sshll.u32 %s650_s2, 4  ;;  %s447_s13 = int_to_ptr.vmem [resolvable:$true] %s446_s13 }
  0x31   :  { %v709_v30 = vrot.slane %v76_v28, %v80_v27  ;;  %v711_v31 = vrot.slane %v76_v28, %v84_v29  ;;  %s615_s14 = scalar_lea.vmem %s447_s13, 2048  ;;  %p620_p3 = scmp.lt.s32.totalorder %s447_s13, %s447_s13 }
  0x32   :  { %221 = vmatpush1.bf16.msra.mxu0 %v547_v6  ;;  %525 = vmatpush1.bf16.msra.mxu1 %v547_v6  ;;  %p616_p2 = scmp.ne.s32.totalorder %s447_s13, %s615_s14  ;;  %p621_p4 = scmp.lt.s32.totalorder %s615_s14, %s615_s14 }
  0x33   :  { %222 = vmatprep.subr.bf16.mxu0 %v548_v7  ;;  %518 = vmatprep.subr.bf16.mxu1 %v548_v7 }
  0x34   :  { %p622_p5 = por %p621_p4, %p620_p3 }
  0x36   :  { %223 = vmatpush1.bf16.msra.mxu0 %v550_v8  ;;  %526 = vmatpush1.bf16.msra.mxu1 %v550_v8  ;;  %p623_p6 = pnand %p622_p5, %p616_p2 }
  0x37   :  { %224 = vmatprep.subr.bf16.mxu0 %v551_v9  ;;  %519 = vmatprep.subr.bf16.mxu1 %v551_v9 }
  0x3a   :  { %225 = vmatpush1.bf16.msra.mxu0 %v553_v10  ;;  %527 = vmatpush1.bf16.msra.mxu1 %v553_v10 }
  0x3b   :  { %226 = vmatprep.subr.bf16.mxu0 %v554_v11  ;;  %520 = vmatprep.subr.bf16.mxu1 %v554_v11 }
  0x3e   :  { %227 = vmatpush1.bf16.msra.mxu0 %v556_v12  ;;  %528 = vmatpush1.bf16.msra.mxu1 %v556_v12 }
  0x3f   :  { %228 = vmatprep.subr.bf16.mxu0 %v557_v13  ;;  %521 = vmatprep.subr.bf16.mxu1 %v557_v13 }
  0x42   :  { %229 = vmatpush1.bf16.msra.mxu0 %v559_v14  ;;  %529 = vmatpush1.bf16.msra.mxu1 %v559_v14 }
  0x43   :  { %230 = vmatprep.subr.bf16.mxu0 %v560_v15  ;;  %522 = vmatprep.subr.bf16.mxu1 %v560_v15 }
  0x46   :  { %231 = vmatpush1.bf16.msra.mxu0 %v562_v16  ;;  %530 = vmatpush1.bf16.msra.mxu1 %v562_v16 }
  0x49   :  { %249 = vmatmul.mubr.bf16.vlgmr.msra.gmra.mrb[0].mxu0 %v563_v17  ;;  %289 = vmatmul.mubr.bf16.vlgmr.msra.gmra.mrb[0].mxu1 %v564_v18 }
  0x4a   :  { %258 = vmatprep.mubr.bf16.mxu0 %v649_v0  ;;  %298 = vmatprep.mubr.bf16.mxu1 %v649_v0 }
  0x51   :  { %259 = vmatmul.mubr.bf16.gmra.mrb[4].mxu0 %v565_v19  ;;  %299 = vmatmul.mubr.bf16.gmra.mrb[4].mxu1 %v566_v20 }
  0x52   :  { %268 = vmatprep.mubr.bf16.mxu0 %v649_v0  ;;  %308 = vmatprep.mubr.bf16.mxu1 %v649_v0 }
  0x59   :  { %269 = vmatmul.mubr.bf16.gmra.mrb[8].mxu0 %v567_v21  ;;  %309 = vmatmul.mubr.bf16.gmra.mrb[8].mxu1 %v568_v22 }
  0x5a   :  { %278 = vmatprep.mubr.bf16.mxu0 %v649_v0  ;;  %318 = vmatprep.mubr.bf16.mxu1 %v649_v0 }
  0x61   :  { %279 = vmatmul.mubr.bf16.gmra.mrb[12].mxu0 %v569_v23  ;;  %319 = vmatmul.mubr.bf16.gmra.mrb[12].mxu1 %v570_v24 }
 0x11c   :  { %v250_v32 = vpop.f32.mrb[0].mxu0  ;;  %v290_v33 = vpop.f32.mrb[0].mxu1 }
 0x11d   :  { %v251_v34 = vadd.f32 %v250_v32, %v709_v30  ;;  %v291_v35 = vadd.f32 %v290_v33, %v709_v30  ;;  %v252_v36 = vpop.f32.mrb[1].mxu0  ;;  %v292_v37 = vpop.f32.mrb[1].mxu1 }
 0x11e   :  { %v253_v38 = vadd.f32 %v252_v36, %v711_v31  ;;  %v293_v39 = vadd.f32 %v292_v37, %v711_v31  ;;  %v254_v40 = vpop.f32.mrb[2].mxu0  ;;  %v294_v41 = vpop.f32.mrb[2].mxu1 }
 0x11f   :  { %v255_v42 = vadd.f32 %v254_v40, %v709_v30  ;;  %v295_v43 = vadd.f32 %v294_v41, %v709_v30  ;;  %v256_v44 = vpop.f32.mrb[3].mxu0  ;;  %v296_v45 = vpop.f32.mrb[3].mxu1 }
 0x120   :  { %v499_v46 = vpack.c.bf16 %v253_v38, %v251_v34  ;;  %v507_v47 = vpack.c.bf16 %v293_v39, %v291_v35  ;;  %v257_v48 = vadd.f32 %v256_v44, %v711_v31  ;;  %v297_v49 = vadd.f32 %v296_v45, %v711_v31 }
 0x122   :  { %425 = vst [vmem:[#allocation7] sm:$0xff] %v499_v46  ;;  %433 = vst [vmem:[#allocation7 + $0x40] sm:$0xff] %v507_v47  ;;  %v500_v50 = vpack.c.bf16 %v257_v48, %v255_v42  ;;  %v508_v51 = vpack.c.bf16 %v297_v49, %v295_v43 }
 0x124   :  { %426 = vst [vmem:[#allocation7 + $0x8] sm:$0xff] %v500_v50  ;;  %434 = vst [vmem:[#allocation7 + $0x48] sm:$0xff] %v508_v51  ;;  %v260_v52 = vpop.f32.mrb[4].mxu0  ;;  %v300_v53 = vpop.f32.mrb[4].mxu1 }
 0x125   :  { %v261_v54 = vadd.f32 %v260_v52, %v709_v30  ;;  %v301_v55 = vadd.f32 %v300_v53, %v709_v30  ;;  %v262_v56 = vpop.f32.mrb[5].mxu0  ;;  %v302_v57 = vpop.f32.mrb[5].mxu1 }
 0x126   :  { %v263_v58 = vadd.f32 %v262_v56, %v711_v31  ;;  %v303_v59 = vadd.f32 %v302_v57, %v711_v31  ;;  %v264_v60 = vpop.f32.mrb[6].mxu0  ;;  %v304_v61 = vpop.f32.mrb[6].mxu1 }
 0x127   :  { %v265_v62 = vadd.f32 %v264_v60, %v709_v30  ;;  %v305_v63 = vadd.f32 %v304_v61, %v709_v30  ;;  %v266_v0 = vpop.f32.mrb[7].mxu0  ;;  %v306_v1 = vpop.f32.mrb[7].mxu1 }
 0x128   :  { %v501_v2 = vpack.c.bf16 %v263_v58, %v261_v54  ;;  %v509_v3 = vpack.c.bf16 %v303_v59, %v301_v55  ;;  %v267_v4 = vadd.f32 %v266_v0, %v711_v31  ;;  %v307_v5 = vadd.f32 %v306_v1, %v711_v31 }
 0x12a   :  { %427 = vst [vmem:[#allocation7 + $0x10] sm:$0xff] %v501_v2  ;;  %435 = vst [vmem:[#allocation7 + $0x50] sm:$0xff] %v509_v3  ;;  %v502_v6 = vpack.c.bf16 %v267_v4, %v265_v62  ;;  %v510_v7 = vpack.c.bf16 %v307_v5, %v305_v63 }
 0x12c   :  { %428 = vst [vmem:[#allocation7 + $0x18] sm:$0xff] %v502_v6  ;;  %436 = vst [vmem:[#allocation7 + $0x58] sm:$0xff] %v510_v7  ;;  %v270_v8 = vpop.f32.mrb[8].mxu0  ;;  %v310_v9 = vpop.f32.mrb[8].mxu1 }
 0x12d   :  { %v271_v10 = vadd.f32 %v270_v8, %v709_v30  ;;  %v311_v11 = vadd.f32 %v310_v9, %v709_v30  ;;  %v272_v12 = vpop.f32.mrb[9].mxu0  ;;  %v312_v13 = vpop.f32.mrb[9].mxu1 }
 0x12e   :  { %v273_v14 = vadd.f32 %v272_v12, %v711_v31  ;;  %v313_v15 = vadd.f32 %v312_v13, %v711_v31  ;;  %v274_v16 = vpop.f32.mrb[10].mxu0  ;;  %v314_v17 = vpop.f32.mrb[10].mxu1 }
 0x12f   :  { %v275_v18 = vadd.f32 %v274_v16, %v709_v30  ;;  %v315_v19 = vadd.f32 %v314_v17, %v709_v30  ;;  %v276_v20 = vpop.f32.mrb[11].mxu0  ;;  %v316_v21 = vpop.f32.mrb[11].mxu1 }
 0x130   :  { %v503_v22 = vpack.c.bf16 %v273_v14, %v271_v10  ;;  %v511_v23 = vpack.c.bf16 %v313_v15, %v311_v11  ;;  %v277_v24 = vadd.f32 %v276_v20, %v711_v31  ;;  %v317_v25 = vadd.f32 %v316_v21, %v711_v31 }
 0x132   :  { %429 = vst [vmem:[#allocation7 + $0x20] sm:$0xff] %v503_v22  ;;  %437 = vst [vmem:[#allocation7 + $0x60] sm:$0xff] %v511_v23  ;;  %v504_v26 = vpack.c.bf16 %v277_v24, %v275_v18  ;;  %v512_v27 = vpack.c.bf16 %v317_v25, %v315_v19 }
 0x134   :  { %430 = vst [vmem:[#allocation7 + $0x28] sm:$0xff] %v504_v26  ;;  %438 = vst [vmem:[#allocation7 + $0x68] sm:$0xff] %v512_v27  ;;  %v280_v28 = vpop.f32.mrb[12].mxu0  ;;  %v320_v29 = vpop.f32.mrb[12].mxu1 }
 0x135   :  { %v281_v32 = vadd.f32 %v280_v28, %v709_v30  ;;  %v321_v33 = vadd.f32 %v320_v29, %v709_v30  ;;  %v282_v34 = vpop.f32.mrb[13].mxu0  ;;  %v322_v35 = vpop.f32.mrb[13].mxu1 }
 0x136   :  { %v283_v36 = vadd.f32 %v282_v34, %v711_v31  ;;  %v323_v37 = vadd.f32 %v322_v35, %v711_v31  ;;  %v284_v38 = vpop.f32.mrb[14].mxu0  ;;  %v324_v39 = vpop.f32.mrb[14].mxu1 }
 0x137   :  { %v285_v40 = vadd.f32 %v284_v38, %v709_v30  ;;  %v325_v41 = vadd.f32 %v324_v39, %v709_v30  ;;  %v286_v42 = vpop.f32.mrb[15].mxu0  ;;  %v326_v43 = vpop.f32.mrb[15].mxu1 }
 0x138   :  { %v505_v44 = vpack.c.bf16 %v283_v36, %v281_v32  ;;  %v513_v45 = vpack.c.bf16 %v323_v37, %v321_v33  ;;  %v287_v46 = vadd.f32 %v286_v42, %v711_v31  ;;  %v327_v47 = vadd.f32 %v326_v43, %v711_v31 }
 0x13a   :  { %431 = vst [vmem:[#allocation7 + $0x30] sm:$0xff] %v505_v44  ;;  %439 = vst [vmem:[#allocation7 + $0x70] sm:$0xff] %v513_v45  ;;  %v506_v48 = vpack.c.bf16 %v287_v46, %v285_v40  ;;  %v514_v49 = vpack.c.bf16 %v327_v47, %v325_v41 }
 0x13c   :  { %432 = vst [vmem:[#allocation7 + $0x38] sm:$0xff] %v506_v48  ;;  %440 = vst [vmem:[#allocation7 + $0x78] sm:$0xff] %v514_v49 }
 0x13d   :  { %626 = shalt.err (!%p623_p6)
}
 0x13e   :  { %s627_s17 = scalar_lea.hbm %s763_s3, 2048 }
 0x13f   :  { %p628_p7 = scmp.ne.s32.totalorder %s763_s3, %s627_s17  ;;  %p631_p8 = scmp.lt.u32.totalorder %s627_s17, %s763_s3 }
 0x141   :  { %p633_p9 = pnand %p631_p8, %p628_p7 }
 0x143   :  { %636 = shalt.err (!%p633_p9)
}
 0x144   :  { %452 = dma.vmem_to_hbm [thread:$0]  %s447_s13, 2048, %s763_s3, [#allocation4], %s647_s0, %s647_s0, %s648_s9  }
 0x145   :  { %641 = dma.done.wait [#allocation4], 2048  }
 0x146   :  { %642 = vsyncadd [#allocation4], 4294965248 }
 0x147   :  { %456 = vsyncpa [#allocation3], 1 }
 0x148   :  { %457 = vsyncpa [#allocation6], 1 }
 0x149   :  { %458 = vsyncpa [#allocation4], 1 }

</bundles_post_ra>
